<compile_context>
chip_gen: v7x
topology: tpu7x:2x2x1
jax: 0.10.0
libtpu: 0.0.40
codegen_flags: <defaults>
</compile_context>

<pallas_src>
import jax
import jax.numpy as jnp
from jax.experimental import pallas as pl
from jax.experimental.pallas import tpu as pltpu

NUM_CLASSES = 10       # classifier output classes
NUM_DET_CLASSES = 3    # detector output classes (prob[:, 0] compared to 1/3)
HIDDEN = 32            # hidden width of both MLP heads
FUSED_H = 2 * HIDDEN   # fused hidden width (classifier | detector)
OUT_W = 128            # lane-dense padded output width
MAX_BM = 256           # batch block (fills the 256x256 MXU on v6e/v7x)


def _round_up(n, m):
    return ((n + m - 1) // m) * m


def _head_kernel(x_ref, w1_ref, b1_ref, w2_ref, b2_ref, out_ref, acc_ref):
    k = pl.program_id(1)

    @pl.when(k == 0)
    def _():
        acc_ref[...] = jnp.zeros_like(acc_ref)

    # ---- fused first layer, partial contraction over this F tile ----------
    # x is f32 in HBM/VMEM; cast to bf16 in-kernel (MXU native, f32 acc).
    acc_ref[...] += jnp.dot(x_ref[...].astype(jnp.bfloat16), w1_ref[...],
                            preferred_element_type=jnp.float32)      # (bm, 64)

    @pl.when(k == pl.num_programs(1) - 1)
    def _():
        h = jnp.maximum(acc_ref[...] + b1_ref[...], 0.0)             # (bm, 64)

        # ---- fused (block-diagonal) second layer -> lane-dense (bm, 128) --
        # cols 0..9  : classifier logits
        # cols 10..12: detector logits
        # cols 13..  : zero (zero weights / zero bias)
        logits = jnp.dot(h.astype(jnp.bfloat16), w2_ref[...],
                         preferred_element_type=jnp.float32) + b2_ref[...]

        lane = jax.lax.broadcasted_iota(jnp.int32, logits.shape, 1)
        is_c = lane < NUM_CLASSES
        is_d = (lane >= NUM_CLASSES) & (lane < NUM_CLASSES + NUM_DET_CLASSES)
        neg_inf = jnp.float32(-jnp.inf)

        # maxclassifier = max(classifier_output, dim=1) via lane mask.
        maxclassifier = jnp.max(jnp.where(is_c, logits, neg_inf),
                                axis=1, keepdims=True)               # (bm, 1)

        # detector softmax over the 3 detector lanes; only prob[:, 0] needed.
        m_d = jnp.max(jnp.where(is_d, logits, neg_inf), axis=1, keepdims=True)
        e = jnp.exp(jnp.where(is_d, logits - m_d, neg_inf))          # 0 off-mask
        denom = jnp.sum(e, axis=1, keepdims=True)
        e0 = jnp.sum(jnp.where(lane == NUM_CLASSES, e, 0.0),
                     axis=1, keepdims=True)
        prob0 = e0 * pl.reciprocal(denom, approx=True)               # (bm, 1)

        # is_adversarial = 1/3 - prob0 ; N_1 = (is_adversarial + 1) * max_c
        n1 = (1.0 / 3.0 - prob0 + 1.0) * maxclassifier               # (bm, 1)

        # Single unmasked, lane-dense store:
        #   out[:, :10] = classifier logits, out[:, 10] = N_1, out[:, 11:] = 0
        out_ref[...] = jnp.where(is_c, logits,
                                 jnp.where(lane == NUM_CLASSES, n1, 0.0))


def prepare_fused_params(params, tk=None):
    """One-time parameter prep (hoisted out of the per-call forward).

    Fuses the two first-layer weights into a single (F_pad, 64) bf16 matrix,
    the two second-layer weights block-diagonally into a lane-dense (64, 128)
    bf16 matrix, and pads F to a multiple of the contraction tile `tk`.
    """
    wc1, bc1, wc2, bc2, wd1, bd1, wd2, bd2 = params
    feat = wc1.shape[0]

    if tk is None:
        # Double-buffered x(f32) + w1(bf16) tiles stay ~<= 10 MiB even at
        # bm=256: fits v5e's 16 MiB scoped default and v7x's 32/64 MiB VMEM.
        tk = 4096 if feat > 4096 else _round_up(feat, 256)
    f_pad = _round_up(feat, tk)

    # Fused first layer: one (F_pad, 64) bf16 matmul instead of two.
    w1 = jnp.concatenate([wc1, wd1], axis=1).astype(jnp.bfloat16)     # (F, 64)
    if f_pad != feat:
        w1 = jnp.pad(w1, ((0, f_pad - feat), (0, 0)))                 # zeros: no-op rows
    b1 = jnp.concatenate([bc1, bd1], axis=1).astype(jnp.float32)      # (1, 64)

    # Fused second layer, block-diagonal, lane-dense, bf16.
    w2 = jnp.zeros((FUSED_H, OUT_W), jnp.float32)
    w2 = w2.at[:HIDDEN, :NUM_CLASSES].set(wc2)
    w2 = w2.at[HIDDEN:, NUM_CLASSES:NUM_CLASSES + NUM_DET_CLASSES].set(wd2)
    w2 = w2.astype(jnp.bfloat16)                                      # (64, 128)
    b2 = jnp.zeros((1, OUT_W), jnp.float32)
    b2 = b2.at[:, :NUM_CLASSES].set(bc2)
    b2 = b2.at[:, NUM_CLASSES:NUM_CLASSES + NUM_DET_CLASSES].set(bd2) # (1, 128)

    return (w1, b1, w2, b2, tk)


def detector_interpreter_classifier(x, fused_params):
    """x: (B, C, H, W) float32. Returns (B, NUM_CLASSES + 1) float32."""
    w1, b1, w2, b2, tk = fused_params
    B = x.shape[0]
    feat = x.shape[1] * x.shape[2] * x.shape[3]
    f_pad = w1.shape[0]

    x_flat = x.reshape(B, feat).astype(jnp.float32)
    if f_pad != feat:
        x_flat = jnp.pad(x_flat, ((0, 0), (0, f_pad - feat)))

    # x stays f32 at the boundary (bf16 cast happens in-kernel), so an 8-row
    # sublane pad is sufficient; large batches are blocked at 256 rows so the
    # leading "parallel" grid axis splits across v7x's two TensorCores.
    b_pad = _round_up(max(B, 8), 8)
    bm = b_pad if b_pad <= MAX_BM else MAX_BM
    b_pad = _round_up(b_pad, bm)
    if b_pad != B:
        x_flat = jnp.pad(x_flat, ((0, b_pad - B), (0, 0)))

    grid = (b_pad // bm, f_pad // tk)

    # VMEM budget: double-buffered x & w1 tiles + output + scratch + headroom.
    vmem_bytes = (2 * bm * tk * 4            # x tiles (f32)
                  + 2 * tk * FUSED_H * 2     # w1 tiles (bf16)
                  + 2 * bm * OUT_W * 4       # output block
                  + bm * FUSED_H * 4         # accumulator scratch
                  + FUSED_H * OUT_W * 2      # w2
                  + 2 * OUT_W * 4            # biases
                  + (4 << 20))               # compiler scratch headroom
    vmem_limit = min(64 << 20, max(16 << 20, vmem_bytes))

    out_padded = pl.pallas_call(
        _head_kernel,
        out_shape=jax.ShapeDtypeStruct((b_pad, OUT_W), jnp.float32),
        grid_spec=pltpu.PrefetchScalarGridSpec(
            num_scalar_prefetch=0,
            grid=grid,
            in_specs=[
                pl.BlockSpec((bm, tk), lambda i, k: (i, k)),          # x
                pl.BlockSpec((tk, FUSED_H), lambda i, k: (k, 0)),     # w1
                pl.BlockSpec((1, FUSED_H), lambda i, k: (0, 0)),      # b1
                pl.BlockSpec((FUSED_H, OUT_W), lambda i, k: (0, 0)),  # w2
                pl.BlockSpec((1, OUT_W), lambda i, k: (0, 0)),        # b2
            ],
            out_specs=pl.BlockSpec((bm, OUT_W), lambda i, k: (i, 0)),
            scratch_shapes=[pltpu.VMEM((bm, FUSED_H), jnp.float32)],
        ),
        compiler_params=pltpu.CompilerParams(
            dimension_semantics=("parallel", "arbitrary"),
            vmem_limit_bytes=vmem_limit,
        ),
    )(x_flat, w1, b1, w2, b2)

    return out_padded[:B, :NUM_CLASSES + 1]


def init_params(key, in_features):
    """Deterministic synthetic weights for the classifier & detector heads."""
    ks = jax.random.split(key, 8)
    s_in = 1.0 / jnp.sqrt(jnp.float32(in_features))
    s_h = 1.0 / jnp.sqrt(jnp.float32(HIDDEN))
    wc1 = jax.random.normal(ks[0], (in_features, HIDDEN), jnp.float32) * s_in
    bc1 = jax.random.normal(ks[1], (1, HIDDEN), jnp.float32) * 0.01
    wc2 = jax.random.normal(ks[2], (HIDDEN, NUM_CLASSES), jnp.float32) * s_h
    bc2 = jax.random.normal(ks[3], (1, NUM_CLASSES), jnp.float32) * 0.01
    wd1 = jax.random.normal(ks[4], (in_features, HIDDEN), jnp.float32) * s_in
    bd1 = jax.random.normal(ks[5], (1, HIDDEN), jnp.float32) * 0.01
    wd2 = jax.random.normal(ks[6], (HIDDEN, NUM_DET_CLASSES), jnp.float32) * s_h
    bd2 = jax.random.normal(ks[7], (1, NUM_DET_CLASSES), jnp.float32) * 0.01
    return (wc1, bc1, wc2, bc2, wd1, bd1, wd2, bd2)


def _reference(x, params):
    """Pure-JAX f32 reference of the module's forward pass."""
    wc1, bc1, wc2, bc2, wd1, bd1, wd2, bd2 = params
    B = x.shape[0]
    xf = x.reshape(B, -1).astype(jnp.float32)
    logits_c = jnp.maximum(xf @ wc1 + bc1, 0.0) @ wc2 + bc2
    logits_d = jnp.maximum(xf @ wd1 + bd1, 0.0) @ wd2 + bd2
    prob_d = jax.nn.softmax(logits_d, axis=1)
    is_adv = 1.0 / 3.0 - prob_d[:, 0]
    maxc = jnp.max(logits_c, axis=1)
    n1 = (is_adv + 1.0) * maxc
    return jnp.concatenate([logits_c, n1[:, None]], axis=1)


if __name__ == "__main__":
    key = jax.random.PRNGKey(0)
    kx, kp = jax.random.split(key)

    # Small NCHW input consistent with an image classifier: (B=2, C=4, 16, 16)
    x = jax.random.normal(kx, (2, 4, 16, 16), jnp.float32)
    params = init_params(kp, 4 * 16 * 16)

    # tk=256 at F=1024 so the test exercises the multi-step (grid k=4)
    # F-tiled accumulator path; production would use the auto-picked tk.
    fused = prepare_fused_params(params, tk=256)

    out = detector_interpreter_classifier(x, fused)
    out = jax.block_until_ready(out)

    ref = _reference(x, params)
    assert out.shape == (2, NUM_CLASSES + 1)
    # Tolerance loosened vs. the pure-f32 reference: the kernel deliberately
    # runs both MXU matmuls in bf16 (f32 accumulation) and uses the EUP
    # approx reciprocal in the softmax denominator.
    assert jnp.allclose(out, ref, atol=5e-2, rtol=5e-2)

    print("KERNEL_OK")
</pallas_src>

<mosaic_0001>
module attributes {stable_mosaic.version = 11 : i64} {
  func.func @_head_kernel(%arg0: i32, %arg1: i32, %arg2: memref<8x256xf32, #tpu.memory_space<vmem>>, %arg3: memref<256x64xbf16, #tpu.memory_space<vmem>>, %arg4: memref<1x64xf32, #tpu.memory_space<vmem>>, %arg5: memref<64x128xbf16, #tpu.memory_space<vmem>>, %arg6: memref<1x128xf32, #tpu.memory_space<vmem>>, %arg7: memref<8x128xf32, #tpu.memory_space<vmem>>, %arg8: memref<8x64xf32, #tpu.memory_space<vmem>>) attributes {dimension_semantics = [#tpu.dimension_semantics<parallel>, #tpu.dimension_semantics<arbitrary>], iteration_bounds = array<i64: 1, 4>, scalar_prefetch = 0 : i64, scratch_operands = 1 : i64, tpu.core_type = #tpu.core_type<tc>, window_params = [{transform_indices = @transform_0, window_bounds = array<i64: 8, 256>}, {transform_indices = @transform_1, window_bounds = array<i64: 256, 64>}, {pipeline_mode = #tpu.pipeline_mode<synchronous>, transform_indices = @transform_2, window_bounds = array<i64: 1, 64>}, {pipeline_mode = #tpu.pipeline_mode<synchronous>, transform_indices = @transform_3, window_bounds = array<i64: 64, 128>}, {pipeline_mode = #tpu.pipeline_mode<synchronous>, transform_indices = @transform_4, window_bounds = array<i64: 1, 128>}, {transform_indices = @transform_5, window_bounds = array<i64: 8, 128>}]} {
    %c0_i32 = arith.constant 0 : i32
    %0 = arith.cmpi eq, %arg1, %c0_i32 : i32
    %1 = arith.extui %0 : i1 to i32
    %c0_i32_0 = arith.constant 0 : i32
    %2 = arith.cmpi ne, %1, %c0_i32_0 : i32
    scf.if %2 {
      %cst_9 = arith.constant 0.000000e+00 : f32
      %13 = vector.broadcast %cst_9 : f32 to vector<8x64xf32>
      %c0_10 = arith.constant 0 : index
      %c0_11 = arith.constant 0 : index
      %14 = vector.load %arg8[%c0_10, %c0_11] : memref<8x64xf32, #tpu.memory_space<vmem>>, vector<8x64xf32>
      tpu.vector_store %arg8[%c0_10, %c0_11], %13 {strides = array<i32>} : memref<8x64xf32, #tpu.memory_space<vmem>>, vector<8x64xf32>,
    } else {
    }
    %c0 = arith.constant 0 : index
    %c0_1 = arith.constant 0 : index
    %3 = vector.load %arg8[%c0, %c0_1] : memref<8x64xf32, #tpu.memory_space<vmem>>, vector<8x64xf32>
    %c0_2 = arith.constant 0 : index
    %c0_3 = arith.constant 0 : index
    %4 = vector.load %arg2[%c0_2, %c0_3] : memref<8x256xf32, #tpu.memory_space<vmem>>, vector<8x256xf32>
    %5 = arith.truncf %4 : vector<8x256xf32> to vector<8x256xbf16>
    %c0_4 = arith.constant 0 : index
    %c0_5 = arith.constant 0 : index
    %6 = vector.load %arg3[%c0_4, %c0_5] : memref<256x64xbf16, #tpu.memory_space<vmem>>, vector<256x64xbf16>
    %cst = arith.constant dense<0.000000e+00> : vector<8x64xf32>
    %7 = tpu.matmul %5, %6, %cst {dimension_numbers = #tpu.dot_dimension_numbers<[1], [0], [0], [1], [0, 0, 1, 1], [], []>} : vector<8x256xbf16>, vector<256x64xbf16>, vector<8x64xf32> -> vector<8x64xf32>
    %8 = arith.addf %3, %7 : vector<8x64xf32>
    %c0_6 = arith.constant 0 : index
    %c0_7 = arith.constant 0 : index
    %9 = vector.load %arg8[%c0_6, %c0_7] : memref<8x64xf32, #tpu.memory_space<vmem>>, vector<8x64xf32>
    tpu.vector_store %arg8[%c0_6, %c0_7], %8 {strides = array<i32>} : memref<8x64xf32, #tpu.memory_space<vmem>>, vector<8x64xf32>,
    %c3_i32 = arith.constant 3 : i32
    %10 = arith.cmpi eq, %arg1, %c3_i32 : i32
    %11 = arith.extui %10 : i1 to i32
    %c0_i32_8 = arith.constant 0 : i32
    %12 = arith.cmpi ne, %11, %c0_i32_8 : i32
    scf.if %12 {
      %c0_9 = arith.constant 0 : index
      %c0_10 = arith.constant 0 : index
      %13 = vector.load %arg8[%c0_9, %c0_10] : memref<8x64xf32, #tpu.memory_space<vmem>>, vector<8x64xf32>
      %c0_11 = arith.constant 0 : index
      %c0_12 = arith.constant 0 : index
      %14 = vector.load %arg4[%c0_11, %c0_12] : memref<1x64xf32, #tpu.memory_space<vmem>>, vector<1x64xf32>
      %15 = vector.broadcast %14 : vector<1x64xf32> to vector<8x64xf32>
      %16 = arith.addf %13, %15 : vector<8x64xf32>
      %cst_13 = arith.constant 0.000000e+00 : f32
      %17 = vector.broadcast %cst_13 : f32 to vector<8x64xf32>
      %18 = arith.maximumf %16, %17 : vector<8x64xf32>
      %19 = arith.truncf %18 : vector<8x64xf32> to vector<8x64xbf16>
      %c0_14 = arith.constant 0 : index
      %c0_15 = arith.constant 0 : index
      %20 = vector.load %arg5[%c0_14, %c0_15] : memref<64x128xbf16, #tpu.memory_space<vmem>>, vector<64x128xbf16>
      %cst_16 = arith.constant dense<0.000000e+00> : vector<8x128xf32>
      %21 = tpu.matmul %19, %20, %cst_16 {dimension_numbers = #tpu.dot_dimension_numbers<[1], [0], [0], [1], [0, 0, 1, 1], [], []>} : vector<8x64xbf16>, vector<64x128xbf16>, vector<8x128xf32> -> vector<8x128xf32>
      %c0_17 = arith.constant 0 : index
      %c0_18 = arith.constant 0 : index
      %22 = vector.load %arg6[%c0_17, %c0_18] : memref<1x128xf32, #tpu.memory_space<vmem>>, vector<1x128xf32>
      %23 = vector.broadcast %22 : vector<1x128xf32> to vector<8x128xf32>
      %24 = arith.addf %21, %23 : vector<8x128xf32>
      %25 = tpu.iota {dimensions = array<i32: 1>} : vector<8x128xi32>
      %c10_i32 = arith.constant 10 : i32
      %26 = vector.broadcast %c10_i32 : i32 to vector<8x128xi32>
      %27 = arith.cmpi slt, %25, %26 : vector<8x128xi32>
      %c10_i32_19 = arith.constant 10 : i32
      %28 = vector.broadcast %c10_i32_19 : i32 to vector<8x128xi32>
      %29 = arith.cmpi sge, %25, %28 : vector<8x128xi32>
      %c13_i32 = arith.constant 13 : i32
      %30 = vector.broadcast %c13_i32 : i32 to vector<8x128xi32>
      %31 = arith.cmpi slt, %25, %30 : vector<8x128xi32>
      %32 = arith.andi %29, %31 : vector<8x128xi1>
      %cst_20 = arith.constant 0xFF800000 : f32
      %33 = vector.broadcast %cst_20 : f32 to vector<8x128xf32>
      %34 = arith.select %27, %24, %33 : vector<8x128xi1>, vector<8x128xf32>
      %cst_21 = arith.constant dense<0xFF800000> : vector<8xf32>
      %35 = vector.multi_reduction <maximumf>, %34, %cst_21 [1] : vector<8x128xf32> to vector<8xf32>
      %36 = vector.shape_cast %35 : vector<8xf32> to vector<8x1xf32>
      %cst_22 = arith.constant 0xFF800000 : f32
      %37 = vector.broadcast %cst_22 : f32 to vector<8x128xf32>
      %38 = arith.select %32, %24, %37 : vector<8x128xi1>, vector<8x128xf32>
      %cst_23 = arith.constant dense<0xFF800000> : vector<8xf32>
      %39 = vector.multi_reduction <maximumf>, %38, %cst_23 [1] : vector<8x128xf32> to vector<8xf32>
      %40 = vector.shape_cast %39 : vector<8xf32> to vector<8x1xf32>
      %41 = vector.broadcast %40 : vector<8x1xf32> to vector<8x128xf32>
      %42 = arith.subf %24, %41 : vector<8x128xf32>
      %cst_24 = arith.constant 0xFF800000 : f32
      %43 = vector.broadcast %cst_24 : f32 to vector<8x128xf32>
      %44 = arith.select %32, %42, %43 : vector<8x128xi1>, vector<8x128xf32>
      %45 = math.exp %44 : vector<8x128xf32>
      %cst_25 = arith.constant dense<0.000000e+00> : vector<8xf32>
      %46 = vector.multi_reduction <add>, %45, %cst_25 [1] : vector<8x128xf32> to vector<8xf32>
      %47 = vector.shape_cast %46 : vector<8xf32> to vector<8x1xf32>
      %c10_i32_26 = arith.constant 10 : i32
      %48 = vector.broadcast %c10_i32_26 : i32 to vector<8x128xi32>
      %49 = arith.cmpi eq, %25, %48 : vector<8x128xi32>
      %cst_27 = arith.constant 0.000000e+00 : f32
      %50 = vector.broadcast %cst_27 : f32 to vector<8x128xf32>
      %51 = arith.select %49, %45, %50 : vector<8x128xi1>, vector<8x128xf32>
      %cst_28 = arith.constant dense<0.000000e+00> : vector<8xf32>
      %52 = vector.multi_reduction <add>, %51, %cst_28 [1] : vector<8x128xf32> to vector<8xf32>
      %53 = vector.shape_cast %52 : vector<8xf32> to vector<8x1xf32>
      %54 = tpu.reciprocal %47 {approx = true} : vector<8x1xf32> -> vector<8x1xf32>
      %55 = arith.mulf %53, %54 : vector<8x1xf32>
      %cst_29 = arith.constant 0.333333343 : f32
      %56 = vector.broadcast %cst_29 : f32 to vector<8x1xf32>
      %57 = arith.subf %56, %55 : vector<8x1xf32>
      %cst_30 = arith.constant 1.000000e+00 : f32
      %58 = vector.broadcast %cst_30 : f32 to vector<8x1xf32>
      %59 = arith.addf %57, %58 : vector<8x1xf32>
      %60 = arith.mulf %59, %36 : vector<8x1xf32>
      %c10_i32_31 = arith.constant 10 : i32
      %61 = vector.broadcast %c10_i32_31 : i32 to vector<8x128xi32>
      %62 = arith.cmpi eq, %25, %61 : vector<8x128xi32>
      %cst_32 = arith.constant 0.000000e+00 : f32
      %63 = vector.shape_cast %60 : vector<8x1xf32> to vector<8x1xf32>
      %64 = vector.broadcast %63 : vector<8x1xf32> to vector<8x128xf32>
      %65 = vector.broadcast %cst_32 : f32 to vector<8x128xf32>
      %66 = arith.select %62, %64, %65 : vector<8x128xi1>, vector<8x128xf32>
      %67 = arith.select %27, %24, %66 : vector<8x128xi1>, vector<8x128xf32>
      %c0_33 = arith.constant 0 : index
      %c0_34 = arith.constant 0 : index
      %68 = vector.load %arg7[%c0_33, %c0_34] : memref<8x128xf32, #tpu.memory_space<vmem>>, vector<8x128xf32>
      tpu.vector_store %arg7[%c0_33, %c0_34], %67 {strides = array<i32>} : memref<8x128xf32, #tpu.memory_space<vmem>>, vector<8x128xf32>,
    } else {
    }
    return
  }
  func.func @transform_0(%arg0: i32, %arg1: i32) -> (i32, i32) {
    %c0_i32 = arith.constant 0 : i32
    return %arg0, %arg1 : i32, i32
  }
  func.func @transform_1(%arg0: i32, %arg1: i32) -> (i32, i32) {
    %c0_i32 = arith.constant 0 : i32
    %c0_i32_0 = arith.constant 0 : i32
    return %arg1, %c0_i32 : i32, i32
  }
  func.func @transform_2(%arg0: i32, %arg1: i32) -> (i32, i32) {
    %c0_i32 = arith.constant 0 : i32
    %c0_i32_0 = arith.constant 0 : i32
    %c0_i32_1 = arith.constant 0 : i32
    return %c0_i32, %c0_i32_0 : i32, i32
  }
  func.func @transform_3(%arg0: i32, %arg1: i32) -> (i32, i32) {
    %c0_i32 = arith.constant 0 : i32
    %c0_i32_0 = arith.constant 0 : i32
    %c0_i32_1 = arith.constant 0 : i32
    return %c0_i32, %c0_i32_0 : i32, i32
  }
  func.func @transform_4(%arg0: i32, %arg1: i32) -> (i32, i32) {
    %c0_i32 = arith.constant 0 : i32
    %c0_i32_0 = arith.constant 0 : i32
    %c0_i32_1 = arith.constant 0 : i32
    return %c0_i32, %c0_i32_0 : i32, i32
  }
  func.func @transform_5(%arg0: i32, %arg1: i32) -> (i32, i32) {
    %c0_i32 = arith.constant 0 : i32
    %c0_i32_0 = arith.constant 0 : i32
    return %arg0, %c0_i32 : i32, i32
  }
}

</mosaic_0001>

<bundles_post_ra>
// kernel: tpu_custom_call.1
= control target key start
LH: loop header
LB: loop body
LE: loop exit
PB: predicated region body
PF: predicated region fallthrough
CT: control target
= control target key end

     0   :  { %10 = vsyncpa [#allocation4], 0  ;;  %s875_s18 = smov 0   ;;  %s877_s19 = smov 0   ;;  %s987_s0 = inlined_call_operand.vmem [shape: f32[8,1024], index: 0, kind: input, shape index: {}]   ;;  %s988_s1 = inlined_call_operand.vmem [shape: bf16[1024,64], index: 1, kind: input, shape index: {}]   ;;  %s989_s2 = inlined_call_operand.vmem [shape: f32[1,64], index: 2, kind: input, shape index: {}]   ;;  %s990_s3 = inlined_call_operand.vmem [shape: bf16[64,128], index: 3, kind: input, shape index: {}]   ;;  %s991_s4 = inlined_call_operand.vmem [shape: f32[1,128], index: 4, kind: input, shape index: {}]   ;;  %s992_s5 = inlined_call_operand.hbm [shape: f32[8,128], index: 5, kind: output, shape index: {}]  }
   0x1   :  { %s879_s20 = smov 0  }
   0x2 LB: > { %s653_s21 = sadd.s32 4294967295, %s839_s20   ;;  %s25_s22 = sadd.s32 1, %s835_s19  ;;  %s839_s20 = sphi %s879_s20, %s16_s20   ;;  %s835_s19 = sphi %s877_s19, %s995_s19   ;;  %s831_s18 = sphi %s875_s18, %s994_s18  }
   0x3   : > { %p26_p0 = scmp.ge.s32.totalorder %s25_s22, 4  ;;  %p656_p1 = scmp.ge.s32.totalorder %s839_s20, 1 }
   0x4   : > { %p218_p2 = scmp.lt.s32.totalorder %s839_s20, 5 }
   0x5   : > { %s997_s22 = smov (%p26_p0, %s25_s22), 0 }
   0x6   : > { %p219_p3 = pnand %p656_p1, %p218_p2 }
   0x7   : > { %s657_s23 = sshll.u32 (!%p219_p3), %s831_s18, 1  ;;  %s659_s24 = sshll.u32 (!%p219_p3), %s831_s18, 5 }
   0x8   : > { %222 = sbr.rel (%p219_p3) target bundleno = 851 (0x353), region = 40  ;;  %p253_p4 = scmp.lt.s32.totalorder (!%p219_p3), %s657_s23, 7 }
   0x9   : > { %p261_p5 = scmp.lt.s32.totalorder (!%p219_p3), %s659_s24, 127  ;;  %p661_p6 = scmp.ne.s32.totalorder (!%p219_p3), %s831_s18, 0 }
   0xf   : > { %s999_s23 = smov (!%p253_p4, %s657_s23), 7  ;;  %s1001_s24 = smov (!%p261_p5, %s659_s24), 127 }
  0x10   : > { %s658_s25 = sshll.u32 %s999_s23, 3  ;;  %s660_s29 = sshll.u32 %s1001_s24, 2  ;;  %vm271_vm0 = vcmask (!%p661_p6), 523264   ;;  %v841_v0 = vmov (!%p661_p6), 0.0  }
  0x11   : > { %s901_s28 = scalar_lea.vmem %s987_s0, %s658_s25  ;;  %s906_s7 = scalar_lea.vmem %s988_s1, %s660_s29  ;;  %272 = vst.msk [vmem:[#allocation2] sm:$0xff] (!%p661_p6), %vm271_vm0, %v841_v0 }
  0x12   : > { %270 = sbr.rel (%p661_p6) target bundleno = 25 (0x19), region = 44 }
  0x19 PF: > { %v763_v1 = vld [vmem:[%s906_s7 + $0x40] sm:$0xff]   ;;  %v765_v3 = vld [vmem:[%s906_s7 + $0x48] sm:$0xff]   ;;  %v767_v5 = vld [vmem:[%s906_s7 + $0x50] sm:$0xff]   ;;  %vm447_vm1 = vcmask 523264   ;;  %p678_p7 = scmp.ne.s32.totalorder %s831_s18, 3 }
  0x1a   : > { %v764_v2 = vld [vmem:[%s906_s7] sm:$0xff]   ;;  %690 = vmatprep.subr.bf16.mxu0 %v763_v1  ;;  %v766_v4 = vld [vmem:[%s906_s7 + $0x8] sm:$0xff]   ;;  %v768_v6 = vld [vmem:[%s906_s7 + $0x10] sm:$0xff]   ;;  %v842_v29 = vmov (!%p678_p7), 0.0   ;;  %vm843_vm2 = vmmov (!%p678_p7), 0   ;;  %v546_v38 = vlaneseq (!%p678_p7) }
  0x1b   : > { %691 = vmatpush3.bf16.msra.mxu0 %v764_v2  ;;  %v769_v7 = vld [vmem:[%s906_s7 + $0x58] sm:$0xff]   ;;  %v771_v9 = vld [vmem:[%s906_s7 + $0x60] sm:$0xff]   ;;  %v773_v11 = vld [vmem:[%s906_s7 + $0x68] sm:$0xff]  }
  0x1c   : > { %692 = vmatprep.subr.bf16.mxu0 %v765_v3  ;;  %v770_v8 = vld [vmem:[%s906_s7 + $0x18] sm:$0xff]   ;;  %v772_v10 = vld [vmem:[%s906_s7 + $0x20] sm:$0xff]   ;;  %v275_v12 = vld [vmem:[%s901_s28 + $0x8] sm:$0xff]  ;;  %v547_v39 = vand.u32 (!%p678_p7), 127, %v546_v38 }
  0x1d   : > { %v277_v13 = vpack.c.bf16 %v275_v12, %v275_v12  ;;  %v774_v14 = vld [vmem:[%s906_s7 + $0x28] sm:$0xff]   ;;  %v775_v15 = vld [vmem:[%s906_s7 + $0x70] sm:$0xff]   ;;  %v777_v17 = vld [vmem:[%s906_s7 + $0x78] sm:$0xff]  }
  0x1e   : > { %v776_v16 = vld [vmem:[%s906_s7 + $0x30] sm:$0xff]   ;;  %v778_v18 = vld [vmem:[%s906_s7 + $0x38] sm:$0xff]   ;;  %v274_v19 = vld [vmem:[%s901_s28] sm:$0xff]  ;;  %vm549_vm3 = vcmp.ge.s32.totalorder (!%p678_p7), %v547_v39, 10  ;;  %vm550_vm4 = vcmp.lt.s32.totalorder (!%p678_p7), %v547_v39, 13  ;;  %vm564_vm6 = vcmp.eq.s32.totalorder (!%p678_p7), %v547_v39, 10 }
  0x1f   : > { %693 = vmatpush3.bf16.msra.mxu0 %v766_v4  ;;  %438 = vmatprep.mubr.bf16.mxu0 %v277_v13  ;;  %v276_v20 = vpack.c.bf16 %v274_v19, %v274_v19  ;;  %v273_v22 = vld [vmem:[#allocation2] sm:$0xff]  ;;  %v780_v30 = vld [vmem:[%s990_s3 + $0x8] sm:$0xff] (!%p678_p7)   ;;  %v781_v34 = vld [vmem:[%s990_s3 + $0x10] sm:$0xff] (!%p678_p7)   ;;  %vm548_vm7 = vcmp.lt.s32.totalorder (!%p678_p7), %v547_v39, 10 }
  0x20   : > { %694 = vmatprep.subr.bf16.mxu0 %v767_v5  ;;  %v779_v28 = vld [vmem:[%s990_s3] sm:$0xff] (!%p678_p7)   ;;  %v782_v36 = vld [vmem:[%s990_s3 + $0x18] sm:$0xff] (!%p678_p7)   ;;  %vm551_vm5 = vmand (!%p678_p7), %vm549_vm3, %vm550_vm4 }
  0x21   : > { %v679_v32 = vld [vmem:[%s989_s2] ss:$0 sm:$0xff] (!%p678_p7) }
  0x22   : > { %v680_v40 = vld [vmem:[%s991_s4] ss:$0 sm:$0xff] (!%p678_p7) }
  0x23   : > { %695 = vmatpush3.bf16.msra.mxu0 %v768_v6 }
  0x24   : > { %696 = vmatprep.subr.bf16.mxu0 %v769_v7 }
  0x27   : > { %697 = vmatpush3.bf16.msra.mxu0 %v770_v8 }
  0x28   : > { %698 = vmatprep.subr.bf16.mxu0 %v771_v9 }
  0x2b   : > { %699 = vmatpush3.bf16.msra.mxu0 %v772_v10 }
  0x2c   : > { %700 = vmatprep.subr.bf16.mxu0 %v773_v11 }
  0x2f   : > { %701 = vmatpush3.bf16.msra.mxu0 %v774_v14 }
  0x30   : > { %702 = vmatprep.subr.bf16.mxu0 %v775_v15 }
  0x33   : > { %703 = vmatpush3.bf16.msra.mxu0 %v776_v16 }
  0x34   : > { %704 = vmatprep.subr.bf16.mxu0 %v777_v17 }
  0x37   : > { %705 = vmatpush3.bf16.msra.mxu0 %v778_v18 }
  0x38   : > { %717 = vmatprep.subr.bf16.mxu0 (!%p678_p7), %v842_v29 }
  0x3a   : > { %439 = vmatmul.mubr.bf16.vlgmr.msra.gmra.mrb[0].mxu0 %v276_v20 }
  0x3b   : > { %718 = vmatpush3.bf16.msra.mxu0 (!%p678_p7), %v779_v28  ;;  %725 = vmatprep.mubr.msk.bf16.mxu0 (!%p678_p7), %vm843_vm2, %v842_v29 }
  0x3c   : > { %719 = vmatprep.subr.bf16.mxu0 (!%p678_p7), %v842_v29 }
  0x3f   : > { %720 = vmatpush3.bf16.msra.mxu0 (!%p678_p7), %v780_v30 }
  0x40   : > { %721 = vmatprep.subr.bf16.mxu0 (!%p678_p7), %v842_v29 }
  0x43   : > { %722 = vmatpush3.bf16.msra.mxu0 (!%p678_p7), %v781_v34 }
  0x44   : > { %723 = vmatprep.subr.bf16.mxu0 (!%p678_p7), %v842_v29 }
  0x47   : > { %724 = vmatpush3.bf16.msra.mxu0 (!%p678_p7), %v782_v36 }
 0x10d   : > { %v706_v21 = vpop.f32.mrb[0].mxu0  ;;  %452 = sbr.rel (%p678_p7) target bundleno = 826 (0x33a), region = 48 }
 0x10e   : > { %v707_v23 = vpop.f32.mrb[1].mxu0 }
 0x10f   : > { %v708_v24 = vadd.f32 %v707_v23, %v706_v21  ;;  %v709_v25 = vpop.f32.mrb[2].mxu0 }
 0x110   : > { %v710_v26 = vpop.f32.mrb[3].mxu0 }
 0x111   : > { %v446_v27 = vadd.f32 %v708_v24, %v273_v22 }
 0x113   : > { %448 = vst.msk [vmem:[#allocation2] sm:$0xff] %vm447_vm1, %v446_v27 }
 0x11a   : > { %v453_v31 = vld [vmem:[#allocation2] sm:$0xff] }
 0x11b   : > { %v461_v33 = vadd.f32 %v679_v32, %v453_v31 }
 0x11d   : > { %v462_v35 = vmax.f32 %v461_v33, 0.0 }
 0x11f   : > { %v463_v37 = vpack.c.bf16 %v462_v35, %v462_v35 }
 0x121   : > { %726 = vmatmul.mubr.msk.bf16.vlgmr.msra.gmra.mrb[0].mxu0 %vm447_vm1, %v463_v37 }
 0x1f4   : > { %v540_v41 = vpop.f32.mrb[0].mxu0 }
 0x1f5   : > { %v541_v42 = vadd.f32 %v680_v40, %v540_v41  ;;  %v727_v43 = vpop.f32.mrb[1].mxu0 }
 0x1f6   : > { %v543_v44 = vpop.f32.mrb[2].mxu0 }
 0x1f7   : > { %v728_v45 = vpop.f32.mrb[3].mxu0  ;;  %v555_v46 = vsel %vm551_vm5, %v541_v42, -inf  ;;  %v552_v53 = vsel %vm548_vm7, %v541_v42, -inf }
 0x1f8   : > { %556 = vmax.xlane.f32.xlu0 %v555_v46 }
 0x285   : > { %v557_v47 = vpop.xlane.xlu0 %556 }
 0x286   : > { %v558_v48 = vsub.f32 %v541_v42, %v557_v47 }
 0x288   : > { %v559_v49 = vsel %vm551_vm5, %v558_v48, -inf }
 0x289   : > { %v560_v50 = vmul.f32 1.442695, %v559_v49 }
 0x28b   : > { %783 = vpow2.f32 %v560_v50 }
 0x295   : > { %v784_v51 = vpop.eup %783 }
 0x296   : > { %562 = vadd.xlane.f32.xlu0 %v784_v51  ;;  %v565_v52 = vsel %vm564_vm6, %v784_v51, 0.0 }
 0x297   : > { %566 = vadd.xlane.f32.xlu1 %v565_v52 }
 0x29b   : > { %553 = vmax.xlane.f32.xlu1 %v552_v53 }
 0x323   : > { %v563_v54 = vpop.xlane.xlu0 %562 }
 0x324   : > { %785 = vrcp.f32 %v563_v54  ;;  %v567_v56 = vpop.xlane.xlu1 %566 }
 0x328   : > { %v554_v60 = vpop.xlane.xlu1 %553 }
 0x32e   : > { %v786_v55 = vpop.eup %785 }
 0x32f   : > { %v569_v57 = vmul.f32 %v786_v55, %v567_v56 }
 0x331   : > { %v570_v58 = vsub.f32 0.33333334, %v569_v57 }
 0x333   : > { %v571_v59 = vadd.f32 1.0, %v570_v58 }
 0x335   : > { %v572_v61 = vmul.f32 %v571_v59, %v554_v60 }
 0x337   : > { %v573_v62 = vsel %vm564_vm6, %v572_v61, 0.0 }
 0x338   : > { %v574_v63 = vsel %vm548_vm7, %v541_v42, %v573_v62 }
 0x339   : > { %575 = vst [vmem:[#allocation3] sm:$0xff] %v574_v63 }
 0x33a PF: > { %p952_p8 = scmp.eq.s32.totalorder %s653_s21, 3  ;;  %s844_s25 = smov [#allocation3]  }
 0x33b   : > { %s585_s26 = sshll.u32 %s844_s25, 4  ;;  %s586_s26 = int_to_ptr.vmem [resolvable:$true] %s585_s26 }
 0x33c   : > { %s787_s27 = scalar_lea.vmem %s586_s26, 128  ;;  %p794_p12 = scmp.lt.s32.totalorder %s586_s26, %s586_s26 }
 0x33d   : > { %p788_p9 = scmp.ne.s32.totalorder %s586_s26, %s787_s27  ;;  %p795_p13 = scmp.lt.s32.totalorder %s787_s27, %s787_s27 }
 0x33f   : > { %p789_p10 = pnand %p788_p9, %p952_p8  ;;  %p796_p0 = por %p795_p13, %p794_p12 }
 0x341   : > { %p790_p11 = pneg %p789_p10 }
 0x343   : > { %p797_p1 = pnand %p796_p0, %p790_p11 }
 0x345   : > { %800 = shalt.err (!%p797_p1)
}
 0x346   : > { %s801_s21 = scalar_lea.hbm %s992_s5, 128 }
 0x347   : > { %p802_p2 = scmp.ne.s32.totalorder %s992_s5, %s801_s21  ;;  %p807_p5 = scmp.lt.u32.totalorder %s801_s21, %s992_s5 }
 0x349   : > { %p803_p3 = pnand %p802_p2, %p952_p8 }
 0x34b   : > { %p804_p4 = pneg %p803_p3 }
 0x34d   : > { %p809_p6 = pnand %p807_p5, %p804_p4 }
 0x34f   : > { %812 = shalt.err (!%p809_p6)
}
 0x350   : > { %730 = dma.vmem_to_hbm [thread:$0]  (%p952_p8), %s586_s26, 128, %s992_s5, [#allocation4]  }
 0x351   : > { %826 = dma.done.wait (%p952_p8), [#allocation4], 128  }
 0x352   : > { %828 = vsyncadd (%p952_p8), [#allocation4], 4294967168 }
 0x353 PF: > { %s16_s20 = sadd.s32 1, %s839_s20   ;;  %s994_s18 = smov %s835_s19 }
 0x354   : > { %p13_p7 = scmp.ge.s32.totalorder %s16_s20, 6   ;;  %s995_s19 = smov %s997_s22 }
 0x356   :  { %15 = sbr.rel (!%p13_p7) target bundleno = 2 (0x2), region = 79 }
 0x35d   :  { %598 = vsyncpa [#allocation4], 1 }
 0x35e   :  { %600 = vsyncpa [#allocation4 + $0x1], 1 }

</bundles_post_ra>
